<compile_context>
chip_gen: v7x
topology: tpu7x:2x2x1
jax: 0.10.0
libtpu: 0.0.40
codegen_flags: <defaults>
</compile_context>

<pallas_src>
import functools

import jax
import jax.numpy as jnp
from jax import lax
from jax.experimental import pallas as pl
from jax.experimental.pallas import tpu as pltpu

EPS = 1e-6
LANES = 128
TILE_ROWS = 8192                      # 8192 x 128 x 4B = 4 MiB per f32 block
NUM_ACCUM = 8                         # independent accumulation chains per tile


def _num_tensorcores() -> int:
    """2 TensorCores per chip only on v7x; v5e/v6e have 1."""
    try:
        kind = jax.devices()[0].device_kind.lower()
    except Exception:  # pragma: no cover - defensive
        return 1
    return 2 if "v7" in kind else 1


def _charbonnier_kernel(x_ref, y_ref, o_ref, *, rows_valid, tiles_per_core,
                        core_axis):
    if core_axis:
        step = pl.program_id(1)                       # reduction step per core
        tile = pl.program_id(0) * tiles_per_core + step
    else:
        step = pl.program_id(0)
        tile = step

    @pl.when(step == 0)
    def _():
        o_ref[...] = jnp.zeros_like(o_ref)

    def partial_sum(apply_mask):
        d = x_ref[...].astype(jnp.float32) - y_ref[...].astype(jnp.float32)
        err = jnp.sqrt(d * d + jnp.float32(EPS))
        if apply_mask:
            # Row-based mask: rows at/after rows_remaining are stale/garbage
            # (boundary tile) or a clamped duplicate (overflow tile on the
            # second core) and must contribute exactly 0.  Mask is applied to
            # `err` BEFORE the sum so NaN/Inf garbage is discarded by select.
            rows_remaining = rows_valid - tile * TILE_ROWS   # <=0 => all masked
            row_idx = lax.broadcasted_iota(jnp.int32, (TILE_ROWS, LANES), 0)
            err = jnp.where(row_idx < rows_remaining, err, 0.0)
        # Two-stage collapse to one (8, LANES) vreg of per-lane partial sums:
        # NUM_ACCUM independent chains of length TILE_ROWS/(8*NUM_ACCUM),
        # then a short combine -> dependent depth ~136 instead of ~1024.
        parts = err.reshape(NUM_ACCUM, TILE_ROWS // (8 * NUM_ACCUM), 8, LANES)
        return jnp.sum(jnp.sum(parts, axis=1), axis=0)[None]

    is_full = (tile + 1) * TILE_ROWS <= rows_valid

    @pl.when(is_full)                 # common path: no masking work at all
    def _():
        o_ref[...] += partial_sum(False)

    @pl.when(jnp.logical_not(is_full))  # boundary / overflow tiles
    def _():
        o_ref[...] += partial_sum(True)


def l1_charbonnier_loss(x, y):
    """Equivalent of PyTorch L1_Charbonnier_loss.forward (sum reduction)."""
    assert x.shape == y.shape
    n = x.size
    if n == 0:
        return jnp.float32(0.0)

    xf = jnp.ravel(x)
    yf = jnp.ravel(y)
    pad = (-n) % LANES                # <=127 zeros; handled analytically below
    if pad:
        xf = jnp.pad(xf, (0, pad))
        yf = jnp.pad(yf, (0, pad))
    rows = (n + pad) // LANES
    x2d = xf.reshape(rows, LANES)
    y2d = yf.reshape(rows, LANES)

    n_tiles = pl.cdiv(rows, TILE_ROWS)
    num_cores = max(1, min(_num_tensorcores(), n_tiles))
    tiles_per_core = pl.cdiv(n_tiles, num_cores)
    core_axis = num_cores > 1

    kernel = functools.partial(
        _charbonnier_kernel, rows_valid=rows, tiles_per_core=tiles_per_core,
        core_axis=core_axis)

    if core_axis:
        grid = (num_cores, tiles_per_core)

        def in_map(c, i):
            # Clamp overflow tiles on the second core; their contribution is
            # fully masked to zero inside the kernel.
            return (jnp.minimum(c * tiles_per_core + i, n_tiles - 1), 0)

        out_map = lambda c, i: (c, 0, 0)
        dims = ("parallel", "arbitrary")
    else:
        grid = (n_tiles,)
        in_map = lambda i: (i, 0)
        out_map = lambda i: (0, 0, 0)
        dims = ("arbitrary",)

    itemsize = jnp.dtype(x.dtype).itemsize
    cost = pl.CostEstimate(
        flops=4 * n,
        transcendentals=n,
        bytes_accessed=2 * n * itemsize + num_cores * 8 * LANES * 4)

    partials = pl.pallas_call(
        kernel,
        out_shape=jax.ShapeDtypeStruct((num_cores, 8, LANES), jnp.float32),
        grid_spec=pltpu.PrefetchScalarGridSpec(
            num_scalar_prefetch=0,
            grid=grid,
            in_specs=[
                pl.BlockSpec((TILE_ROWS, LANES), in_map),
                pl.BlockSpec((TILE_ROWS, LANES), in_map),
            ],
            out_specs=pl.BlockSpec((1, 8, LANES), out_map),
        ),
        compiler_params=pltpu.CompilerParams(
            dimension_semantics=dims,
            vmem_limit_bytes=32 * 1024 * 1024,
        ),
        cost_estimate=cost,
    )(x2d, y2d)

    total = jnp.sum(partials)
    if pad:
        # Each zero-padded lane element of the final valid row contributes
        # exactly sqrt(eps); remove it analytically instead of masking lanes.
        total = total - jnp.float32(pad) * jnp.sqrt(jnp.float32(EPS))
    return total


def _reference(x, y):
    d = x.astype(jnp.float32) - y.astype(jnp.float32)
    return jnp.sum(jnp.sqrt(d * d + EPS))


if __name__ == "__main__":
    key = jax.random.PRNGKey(0)
    kx, ky = jax.random.split(key)
    # Shapes consistent with a typical NCHW image-restoration input.
    X = jax.random.normal(kx, (2, 4, 16, 16), dtype=jnp.float32)
    Y = jax.random.normal(ky, (2, 4, 16, 16), dtype=jnp.float32)

    loss = l1_charbonnier_loss(X, Y)
    loss = jax.block_until_ready(loss)

    ref = _reference(X, Y)
    assert jnp.allclose(loss, ref, rtol=1e-4, atol=1e-2), (loss, ref)
    print("KERNEL_OK")
</pallas_src>

<mosaic_0001>
module attributes {stable_mosaic.version = 11 : i64} {
  func.func @_charbonnier_kernel(%arg0: i32, %arg1: memref<8192x128xf32, #tpu.memory_space<vmem>>, %arg2: memref<8192x128xf32, #tpu.memory_space<vmem>>, %arg3: memref<1x8x128xf32, #tpu.memory_space<vmem>>) attributes {dimension_semantics = [#tpu.dimension_semantics<arbitrary>], iteration_bounds = array<i64: 1>, scalar_prefetch = 0 : i64, scratch_operands = 0 : i64, tpu.core_type = #tpu.core_type<tc>, window_params = [{transform_indices = @transform_0, window_bounds = array<i64: 8192, 128>}, {transform_indices = @transform_1, window_bounds = array<i64: 8192, 128>}, {pipeline_mode = #tpu.pipeline_mode<synchronous>, transform_indices = @transform_2, window_bounds = array<i64: 1, 8, 128>}]} {
    %c0_i32 = arith.constant 0 : i32
    %0 = arith.cmpi eq, %arg0, %c0_i32 : i32
    %1 = arith.extui %0 : i1 to i32
    %c0_i32_0 = arith.constant 0 : i32
    %2 = arith.cmpi ne, %1, %c0_i32_0 : i32
    scf.if %2 {
      %cst = arith.constant 0.000000e+00 : f32
      %11 = vector.broadcast %cst : f32 to vector<1x8x128xf32>
      %c0 = arith.constant 0 : index
      %c0_3 = arith.constant 0 : index
      %c0_4 = arith.constant 0 : index
      %12 = vector.load %arg3[%c0, %c0_3, %c0_4] : memref<1x8x128xf32, #tpu.memory_space<vmem>>, vector<1x8x128xf32>
      tpu.vector_store %arg3[%c0, %c0_3, %c0_4], %11 {strides = array<i32>} : memref<1x8x128xf32, #tpu.memory_space<vmem>>, vector<1x8x128xf32>,
    } else {
    }
    %c1_i32 = arith.constant 1 : i32
    %3 = arith.addi %arg0, %c1_i32 : i32
    %c8192_i32 = arith.constant 8192 : i32
    %4 = arith.muli %3, %c8192_i32 : i32
    %c16_i32 = arith.constant 16 : i32
    %5 = arith.cmpi sle, %4, %c16_i32 : i32
    %6 = arith.extui %5 : i1 to i32
    %c0_i32_1 = arith.constant 0 : i32
    %7 = arith.cmpi ne, %6, %c0_i32_1 : i32
    scf.if %7 {
      %c0 = arith.constant 0 : index
      %c0_3 = arith.constant 0 : index
      %c0_4 = arith.constant 0 : index
      %11 = vector.load %arg3[%c0, %c0_3, %c0_4] : memref<1x8x128xf32, #tpu.memory_space<vmem>>, vector<1x8x128xf32>
      %c0_5 = arith.constant 0 : index
      %c0_6 = arith.constant 0 : index
      %12 = vector.load %arg1[%c0_5, %c0_6] : memref<8192x128xf32, #tpu.memory_space<vmem>>, vector<8192x128xf32>
      %c0_7 = arith.constant 0 : index
      %c0_8 = arith.constant 0 : index
      %13 = vector.load %arg2[%c0_7, %c0_8] : memref<8192x128xf32, #tpu.memory_space<vmem>>, vector<8192x128xf32>
      %14 = arith.subf %12, %13 : vector<8192x128xf32>
      %15 = arith.mulf %14, %14 : vector<8192x128xf32>
      %cst = arith.constant 9.99999997E-7 : f32
      %16 = vector.broadcast %cst : f32 to vector<8192x128xf32>
      %17 = arith.addf %15, %16 : vector<8192x128xf32>
      %18 = math.sqrt %17 : vector<8192x128xf32>
      %19 = vector.shape_cast %18 : vector<8192x128xf32> to vector<8x128x8x128xf32>
      %cst_9 = arith.constant dense<0.000000e+00> : vector<8x8x128xf32>
      %20 = vector.multi_reduction <add>, %19, %cst_9 [1] : vector<8x128x8x128xf32> to vector<8x8x128xf32>
      %cst_10 = arith.constant dense<0.000000e+00> : vector<8x128xf32>
      %21 = vector.multi_reduction <add>, %20, %cst_10 [0] : vector<8x8x128xf32> to vector<8x128xf32>
      %22 = vector.shape_cast %21 : vector<8x128xf32> to vector<1x8x128xf32>
      %23 = arith.addf %11, %22 : vector<1x8x128xf32>
      %c0_11 = arith.constant 0 : index
      %c0_12 = arith.constant 0 : index
      %c0_13 = arith.constant 0 : index
      %24 = vector.load %arg3[%c0_11, %c0_12, %c0_13] : memref<1x8x128xf32, #tpu.memory_space<vmem>>, vector<1x8x128xf32>
      tpu.vector_store %arg3[%c0_11, %c0_12, %c0_13], %23 {strides = array<i32>} : memref<1x8x128xf32, #tpu.memory_space<vmem>>, vector<1x8x128xf32>,
    } else {
    }
    %true = arith.constant true
    %8 = arith.xori %5, %true : i1
    %9 = arith.extui %8 : i1 to i32
    %c0_i32_2 = arith.constant 0 : i32
    %10 = arith.cmpi ne, %9, %c0_i32_2 : i32
    scf.if %10 {
      %c0 = arith.constant 0 : index
      %c0_3 = arith.constant 0 : index
      %c0_4 = arith.constant 0 : index
      %11 = vector.load %arg3[%c0, %c0_3, %c0_4] : memref<1x8x128xf32, #tpu.memory_space<vmem>>, vector<1x8x128xf32>
      %c0_5 = arith.constant 0 : index
      %c0_6 = arith.constant 0 : index
      %12 = vector.load %arg1[%c0_5, %c0_6] : memref<8192x128xf32, #tpu.memory_space<vmem>>, vector<8192x128xf32>
      %c0_7 = arith.constant 0 : index
      %c0_8 = arith.constant 0 : index
      %13 = vector.load %arg2[%c0_7, %c0_8] : memref<8192x128xf32, #tpu.memory_space<vmem>>, vector<8192x128xf32>
      %14 = arith.subf %12, %13 : vector<8192x128xf32>
      %15 = arith.mulf %14, %14 : vector<8192x128xf32>
      %cst = arith.constant 9.99999997E-7 : f32
      %16 = vector.broadcast %cst : f32 to vector<8192x128xf32>
      %17 = arith.addf %15, %16 : vector<8192x128xf32>
      %18 = math.sqrt %17 : vector<8192x128xf32>
      %c8192_i32_9 = arith.constant 8192 : i32
      %19 = arith.muli %arg0, %c8192_i32_9 : i32
      %c16_i32_10 = arith.constant 16 : i32
      %20 = arith.subi %c16_i32_10, %19 : i32
      %21 = tpu.iota {dimensions = array<i32: 0>} : vector<8192x128xi32>
      %22 = vector.broadcast %20 : i32 to vector<8192x128xi32>
      %23 = arith.cmpi slt, %21, %22 : vector<8192x128xi32>
      %cst_11 = arith.constant 0.000000e+00 : f32
      %24 = vector.broadcast %cst_11 : f32 to vector<8192x128xf32>
      %25 = arith.select %23, %18, %24 : vector<8192x128xi1>, vector<8192x128xf32>
      %26 = vector.shape_cast %25 : vector<8192x128xf32> to vector<8x128x8x128xf32>
      %cst_12 = arith.constant dense<0.000000e+00> : vector<8x8x128xf32>
      %27 = vector.multi_reduction <add>, %26, %cst_12 [1] : vector<8x128x8x128xf32> to vector<8x8x128xf32>
      %cst_13 = arith.constant dense<0.000000e+00> : vector<8x128xf32>
      %28 = vector.multi_reduction <add>, %27, %cst_13 [0] : vector<8x8x128xf32> to vector<8x128xf32>
      %29 = vector.shape_cast %28 : vector<8x128xf32> to vector<1x8x128xf32>
      %30 = arith.addf %11, %29 : vector<1x8x128xf32>
      %c0_14 = arith.constant 0 : index
      %c0_15 = arith.constant 0 : index
      %c0_16 = arith.constant 0 : index
      %31 = vector.load %arg3[%c0_14, %c0_15, %c0_16] : memref<1x8x128xf32, #tpu.memory_space<vmem>>, vector<1x8x128xf32>
      tpu.vector_store %arg3[%c0_14, %c0_15, %c0_16], %30 {strides = array<i32>} : memref<1x8x128xf32, #tpu.memory_space<vmem>>, vector<1x8x128xf32>,
    } else {
    }
    return
  }
  func.func @transform_0(%arg0: i32) -> (i32, i32) {
    %c0_i32 = arith.constant 0 : i32
    %c0_i32_0 = arith.constant 0 : i32
    return %arg0, %c0_i32 : i32, i32
  }
  func.func @transform_1(%arg0: i32) -> (i32, i32) {
    %c0_i32 = arith.constant 0 : i32
    %c0_i32_0 = arith.constant 0 : i32
    return %arg0, %c0_i32 : i32, i32
  }
  func.func @transform_2(%arg0: i32) -> (i32, i32, i32) {
    %c0_i32 = arith.constant 0 : i32
    %c0_i32_0 = arith.constant 0 : i32
    %c0_i32_1 = arith.constant 0 : i32
    %c0_i32_2 = arith.constant 0 : i32
    return %c0_i32, %c0_i32_0, %c0_i32_1 : i32, i32, i32
  }
}

</mosaic_0001>

<bundles_post_ra>
// kernel: tpu_custom_call.1
= control target key start
LH: loop header
LB: loop body
LE: loop exit
PB: predicated region body
PF: predicated region fallthrough
CT: control target
= control target key end

     0   :  { %7 = vsyncpa [#allocation3], 0  ;;  %s29913_s0 = inlined_call_operand.hbm [shape: f32[16,128], index: 0, kind: input, shape index: {}]   ;;  %s29914_s1 = inlined_call_operand.hbm [shape: f32[16,128], index: 1, kind: input, shape index: {}]   ;;  %s29915_s2 = inlined_call_operand.hbm [shape: f32[1,8,128], index: 2, kind: output, shape index: {}]  }
   0x1   :  { %8 = vsyncpa [#allocation6], 0 }
   0x2   :  { %9 = vsyncpa [#allocation4], 0 }
   0x3   :  { %14 = vsyncadd [#allocation3], 130816  ;;  %s29857_s9 = smov [#allocation2]   ;;  %s29785_s13 = scalar_lea.hbm %s29913_s0, 256 }
   0x4   :  { %s15_s10 = sshll.u32 %s29857_s9, 4  ;;  %p29786_p0 = scmp.ne.s32.totalorder %s29913_s0, %s29785_s13  ;;  %s16_s10 = int_to_ptr.vmem [resolvable:$true] %s15_s10 }
   0x5   :  { %p29789_p1 = scmp.lt.u32.totalorder %s29785_s13, %s29913_s0 }
   0x7   :  { %p29791_p2 = pnand %p29789_p1, %p29786_p0 }
   0x9   :  { %29794 = shalt.err (!%p29791_p2)
}
   0xa   :  { %s29795_s18 = scalar_lea.vmem %s16_s10, 256  ;;  %s29799_s19 = scalar_lea.vmem %s16_s10, 131072 }
   0xb   :  { %p29796_p3 = scmp.ne.s32.totalorder %s16_s10, %s29795_s18  ;;  %p29800_p4 = scmp.lt.s32.totalorder %s16_s10, %s16_s10 }
   0xc   :  { %p29801_p5 = scmp.lt.s32.totalorder %s29799_s19, %s29795_s18 }
   0xe   :  { %p29802_p6 = por %p29801_p5, %p29800_p4 }
  0x10   :  { %p29803_p7 = pnand %p29802_p6, %p29796_p3 }
  0x12   :  { %29806 = shalt.err (!%p29803_p7)
}
  0x13   :  { %s29858_s20 = smov 128   ;;  %s29859_s21 = smov 8  }
  0x14   :  { %21 = dma.hbm_to_vmem [thread:$0]  %s29913_s0, 256, %s16_s10, [#allocation3], %s29858_s20, %s29858_s20, %s29859_s21  }
  0x15   :  { %26 = vsyncadd [#allocation6], 130816  ;;  %s29860_s24 = smov [#allocation5]   ;;  %s29807_s28 = scalar_lea.hbm %s29914_s1, 256 }
  0x16   :  { %s27_s25 = sshll.u32 %s29860_s24, 4  ;;  %p29808_p8 = scmp.ne.s32.totalorder %s29914_s1, %s29807_s28  ;;  %s28_s25 = int_to_ptr.vmem [resolvable:$true] %s27_s25 }
  0x17   :  { %p29811_p9 = scmp.lt.u32.totalorder %s29807_s28, %s29914_s1 }
  0x19   :  { %p29813_p10 = pnand %p29811_p9, %p29808_p8 }
  0x1b   :  { %29816 = shalt.err (!%p29813_p10)
}
  0x1c   :  { %s29817_s5 = scalar_lea.vmem %s28_s25, 256  ;;  %s29821_s0 = scalar_lea.vmem %s28_s25, 131072 }
  0x1d   :  { %p29818_p11 = scmp.ne.s32.totalorder %s28_s25, %s29817_s5  ;;  %p29822_p12 = scmp.lt.s32.totalorder %s28_s25, %s28_s25 }
  0x1e   :  { %p29823_p13 = scmp.lt.s32.totalorder %s29821_s0, %s29817_s5 }
  0x20   :  { %p29824_p0 = por %p29823_p13, %p29822_p12 }
  0x22   :  { %p29825_p1 = pnand %p29824_p0, %p29818_p11 }
  0x24   :  { %29828 = shalt.err (!%p29825_p1)
}
  0x25   :  { %33 = dma.hbm_to_vmem [thread:$0]  %s29914_s1, 256, %s28_s25, [#allocation6], %s29858_s20, %s29858_s20, %s29859_s21  }
  0x26   :  { %29851 = dma.done.wait [#allocation3], 131072  }
  0x27   :  { %29852 = vsyncadd [#allocation3], 4294836224 }
  0x28   :  { %29853 = dma.done.wait [#allocation6], 131072  }
  0x29   :  { %29854 = vsyncadd [#allocation6], 4294836224  ;;  %v13370_v0 = vld [vmem:[#allocation2] sm:$0xff]  ;;  %v13371_v1 = vld [vmem:[#allocation2 + $0x8] sm:$0xff]  ;;  %s29861_s1 = smov [#allocation7]  }
  0x2a   :  { %v14394_v2 = vld [vmem:[#allocation5] sm:$0xff]  ;;  %v14395_v3 = vld [vmem:[#allocation5 + $0x8] sm:$0xff]  ;;  %s29765_s8 = sshll.u32 %s29861_s1, 4  ;;  %s29766_s8 = int_to_ptr.vmem [resolvable:$true] %s29765_s8 }
  0x2b   :  { %v15418_v4 = vsub.f32 %v13370_v0, %v14394_v2  ;;  %v15419_v5 = vsub.f32 %v13371_v1, %v14395_v3  ;;  %s29829_s9 = scalar_lea.vmem %s29766_s8, 128  ;;  %p29834_p3 = scmp.lt.s32.totalorder %s29766_s8, %s29766_s8 }
  0x2c   :  { %p29830_p2 = scmp.ne.s32.totalorder %s29766_s8, %s29829_s9  ;;  %p29835_p4 = scmp.lt.s32.totalorder %s29829_s9, %s29829_s9 }
  0x2d   :  { %v16442_v6 = vmul.f32 %v15418_v4, %v15418_v4  ;;  %v16443_v7 = vmul.f32 %v15419_v5, %v15419_v5 }
  0x2e   :  { %p29836_p5 = por %p29835_p4, %p29834_p3 }
  0x2f   :  { %v17466_v8 = vadd.f32 1e-06, %v16442_v6  ;;  %v17467_v9 = vadd.f32 1e-06, %v16443_v7 }
  0x30   :  { %p29837_p6 = pnand %p29836_p5, %p29830_p2 }
  0x31   :  { %29781 = vrsqrt.f32 %v17466_v8  ;;  %vm18492_vm0 = vcmp.eq.f32.partialorder %v17466_v8, inf  ;;  %v18495_v11 = vand.u32 2147483648, %v17466_v8  ;;  %vm18494_vm1 = vcmp.eq.f32.partialorder %v17466_v8, 0.0 }
  0x32   :  { %29783 = vrsqrt.f32 %v17467_v9  ;;  %vm18499_vm2 = vcmp.eq.f32.partialorder %v17467_v9, inf  ;;  %v18502_v14 = vand.u32 2147483648, %v17467_v9  ;;  %vm18501_vm3 = vcmp.eq.f32.partialorder %v17467_v9, 0.0 }
  0x3b   :  { %v29782_v10 = vpop.eup %29781 }
  0x3c   :  { %v29784_v12 = vpop.eup %29783  ;;  %v18491_v13 = vmul.f32 %v29782_v10, %v17466_v8 }
  0x3d   :  { %v18498_v15 = vmul.f32 %v29784_v12, %v17467_v9 }
  0x3e   :  { %v18493_v16 = vsel %vm18492_vm0, %v17466_v8, %v18491_v13 }
  0x3f   :  { %v18496_v17 = vsel %vm18494_vm1, %v18495_v11, %v18493_v16  ;;  %v18500_v18 = vsel %vm18499_vm2, %v17467_v9, %v18498_v15 }
  0x40   :  { %v18503_v19 = vsel %vm18501_vm3, %v18502_v14, %v18500_v18 }
  0x41   :  { %v28734_v20 = vadd.f32 %v18503_v19, %v18496_v17 }
  0x43   :  { %29758 = vst [vmem:[#allocation7] sm:$0xff] %v28734_v20 }
  0x44   :  { %29840 = shalt.err (!%p29837_p6)
}
  0x45   :  { %s29841_s12 = scalar_lea.hbm %s29915_s2, 128 }
  0x46   :  { %p29842_p7 = scmp.ne.s32.totalorder %s29915_s2, %s29841_s12  ;;  %p29845_p8 = scmp.lt.u32.totalorder %s29841_s12, %s29915_s2 }
  0x48   :  { %p29847_p9 = pnand %p29845_p8, %p29842_p7 }
  0x4a   :  { %29850 = shalt.err (!%p29847_p9)
}
  0x4b   :  { %29768 = dma.vmem_to_hbm [thread:$0]  %s29766_s8, 128, %s29915_s2, [#allocation4]  }
  0x4c   :  { %29855 = dma.done.wait [#allocation4], 128  }
  0x4d   :  { %29856 = vsyncadd [#allocation4], 4294967168 }
  0x4e   :  { %29772 = vsyncpa [#allocation3], 1 }
  0x4f   :  { %29773 = vsyncpa [#allocation6], 1 }
  0x50   :  { %29774 = vsyncpa [#allocation4], 1 }

</bundles_post_ra>
